<compile_context>
chip_gen: v5e
topology: v5e:2x2
jax: 0.10.0
libtpu: 0.0.40
codegen_flags: <defaults>
</compile_context>

<pallas_src>
import math

import jax
import jax.numpy as jnp
from jax import lax
from jax.experimental import pallas as pl
from jax.experimental.pallas import tpu as pltpu


def _round_up(x, m):
    return -(-x // m) * m


_VMEM_INPUT_BUDGET = 20 << 20  # double-buffered T/R/D tiles; safe on v5e scoped / v7x 64 MiB


def _make_kernel(fs, H, W, Wo, tho, thr):
    """Builds the kernel body with all sizes baked in as Python constants.

    Block shapes seen by the kernel:
      t/r/d_ref : (1, thr, W)      thr = tho*fs input rows of one (n, c) image
      l_ref     : (tho, thr)       0/1 row-pooling selector     (constant)
      p_ref     : (W,  Wo)         0/1 column-pooling selector  (constant)
      out_ref   : (6, 1, tho, Wo)  [mean_T, var_T, mean_R, var_R, mean_D, var_D]
    """
    f32 = jnp.float32
    hi = lax.Precision.HIGHEST

    def kernel(t_ref, r_ref, d_ref, l_ref, p_ref, out_ref):
        hb = pl.program_id(1)

        # Zero rows past the image bottom: handles the clipped last window and
        # any rows of a partial edge block the bounded block-DMA did not fill.
        row = hb * thr + lax.broadcasted_iota(jnp.int32, (thr, 1), 0)
        x_valid = row < H

        # ceil_mode divisor: number of in-bounds elements in every window.
        ho = hb * tho + lax.broadcasted_iota(jnp.int32, (tho, Wo), 0)
        wo = lax.broadcasted_iota(jnp.int32, (tho, Wo), 1)
        hcnt = jnp.clip(H - ho * fs, 1, fs)   # == min(fs, H - ho*fs) for valid rows
        wcnt = jnp.clip(W - wo * fs, 1, fs)
        inv_cnt = 1.0 / (hcnt * wcnt).astype(f32)

        L = l_ref[...]            # (tho, thr)
        P = p_ref[...]            # (W, Wo)

        def stats(x_ref):
            x = jnp.where(x_valid, x_ref[0], 0.0)                           # (thr, W)
            s1 = jnp.dot(jnp.dot(L, x, precision=hi, preferred_element_type=f32),
                         P, precision=hi, preferred_element_type=f32)       # (tho, Wo)
            s2 = jnp.dot(jnp.dot(L, x * x, precision=hi, preferred_element_type=f32),
                         P, precision=hi, preferred_element_type=f32)
            m = s1 * inv_cnt
            return m, s2 * inv_cnt - m * m   # E[x^2] - mean^2 (matches reference formula)

        m, v = stats(t_ref)
        out_ref[0, 0, :, :] = m
        out_ref[1, 0, :, :] = v
        m, v = stats(r_ref)
        out_ref[2, 0, :, :] = m
        out_ref[3, 0, :, :] = v
        m, v = stats(d_ref)
        out_ref[4, 0, :, :] = m
        out_ref[5, 0, :, :] = v

    return kernel


def _plan(N, C, H, W, fs):
    """Pick the H tile: tho output rows (= tho*fs input rows) per grid step."""
    Ho, Wo = -(-H // fs), -(-W // fs)
    NC = N * C
    w_lanes = _round_up(W, 128)
    per_tho = 3 * 2 * fs * w_lanes * 4               # double-buffered input bytes per output row
    cap_l = int(math.sqrt((2 << 20) / (8.0 * fs)))   # keep 0/1 row selector <= ~2 MiB
    cap_i = (2 << 20) // (8 * w_lanes)               # keep (tho, W) f32 intermediates <= ~2 MiB
    tho_cap = (min(H // fs, Ho) // 8) * 8            # largest mult-of-8 tile fully inside H
    split_for_cores = (NC == 1 and Ho >= 16)         # keep >=2 grid steps for v7x's two TCs

    fits_whole = (Ho * per_tho <= _VMEM_INPUT_BUDGET and Ho <= cap_l and Ho <= cap_i)
    if tho_cap >= 8 and (not fits_whole or split_for_cores):
        tho = min(_VMEM_INPUT_BUDGET // per_tho, cap_l, cap_i, tho_cap)
        if split_for_cores:
            tho = min(tho, _round_up(-(-Ho // 2), 8))
        tho = max((tho // 8) * 8, 8)
        thr, pad_h = tho * fs, False
    else:
        # Whole (zero-padded) image height per step: full-dim blocks have no
        # (8,128) divisibility constraints.
        # TODO(synk): also tile along W for shapes where even one padded-height
        # slab exceeds the VMEM budget (tiny Ho with huge fs*W).
        tho, thr = Ho, Ho * fs
        pad_h = (thr != H)
    return NC, Ho, Wo, tho, thr, pad_h


def cvvdp_feature_pooling(T, R, D, feature_size):
    """Pallas implementation of cvvdp_feature_pooling.forward.

    T, R, D: float arrays of shape [N, C, H, W] (NCHW, as in PyTorch).
    Returns F of shape [C, H_out, W_out, N, 6] (float32).
    """
    fs = int(feature_size)
    N, C, H, W = T.shape
    assert R.shape == T.shape and D.shape == T.shape

    NC, Ho, Wo, tho, thr, pad_h = _plan(N, C, H, W, fs)
    h_blocks = -(-Ho // tho)
    w_lanes = _round_up(W, 128)

    def prep(x):
        x = x.reshape(NC, H, W).astype(jnp.float32)   # free: merges leading dims only
        if pad_h:                                     # rare small-image fallback
            x = jnp.pad(x, ((0, 0), (0, thr - H), (0, 0)))
        return x

    t, r, d = prep(T), prep(R), prep(D)

    # 0/1 pooling selector matrices, fed to the MXU inside the kernel.
    L = (jnp.arange(thr)[None, :] // fs == jnp.arange(tho)[:, None]).astype(jnp.float32)
    P = (jnp.arange(W)[:, None] // fs == jnp.arange(Wo)[None, :]).astype(jnp.float32)

    data_spec = pl.BlockSpec((1, thr, W), lambda nc, hb: (nc, hb, 0))
    const_map = lambda nc, hb: (0, 0)

    vmem_est = (
        3 * 2 * _round_up(thr, 8) * w_lanes * 4                     # T/R/D tiles (double-buffered)
        + 2 * _round_up(tho, 8) * _round_up(thr, 128) * 4           # L
        + 2 * _round_up(W, 8) * _round_up(Wo, 128) * 4              # P
        + 2 * 6 * _round_up(tho, 8) * _round_up(Wo, 128) * 4        # output tiles
    )
    vmem_limit = int(min(max(vmem_est + (8 << 20), 32 << 20), 64 << 20))

    out = pl.pallas_call(
        _make_kernel(fs, H, W, Wo, tho, thr),
        out_shape=jax.ShapeDtypeStruct((6, NC, Ho, Wo), jnp.float32),
        grid=(NC, h_blocks),
        in_specs=[data_spec, data_spec, data_spec,
                  pl.BlockSpec((tho, thr), const_map),
                  pl.BlockSpec((W, Wo), const_map)],
        out_specs=pl.BlockSpec((6, 1, tho, Wo), lambda nc, hb: (0, nc, hb, 0)),
        compiler_params=pltpu.CompilerParams(
            dimension_semantics=("parallel", "parallel"),
            vmem_limit_bytes=vmem_limit,
        ),
    )(t, r, d, L, P)

    # [6, N*C, Ho, Wo] -> [C, Ho, Wo, N, 6]  (cheap: output is ~fs^2 x smaller than inputs)
    return jnp.transpose(out.reshape(6, N, C, Ho, Wo), (2, 3, 4, 1, 0))


def _reference(T, R, D, fs):
    """Pure-JAX reference mirroring the PyTorch module."""
    def avg_pool(x):
        N, C, H, W = x.shape
        Ho, Wo = -(-H // fs), -(-W // fs)
        xp = jnp.pad(x.astype(jnp.float32),
                     ((0, 0), (0, 0), (0, Ho * fs - H), (0, Wo * fs - W)))
        s = xp.reshape(N, C, Ho, fs, Wo, fs).sum(axis=(3, 5))
        hc = jnp.minimum(fs, H - jnp.arange(Ho) * fs).astype(jnp.float32)
        wc = jnp.minimum(fs, W - jnp.arange(Wo) * fs).astype(jnp.float32)
        return s / (hc[:, None] * wc[None, :])[None, None]

    perm = (1, 2, 3, 0)
    stats = []
    for X in (T, R, D):
        m = jnp.transpose(avg_pool(X), perm)
        v = jnp.transpose(avg_pool(X * X), perm) - m * m
        stats += [m, v]
    return jnp.stack(stats, axis=4)


def _check(N, C, H, W, fs, key):
    k1, k2, k3 = jax.random.split(key, 3)
    T = jax.random.normal(k1, (N, C, H, W), dtype=jnp.float32)
    R = jax.random.normal(k2, (N, C, H, W), dtype=jnp.float32)
    D = jax.random.normal(k3, (N, C, H, W), dtype=jnp.float32)

    F = jax.block_until_ready(cvvdp_feature_pooling(T, R, D, fs))
    F_ref = _reference(T, R, D, fs)

    assert F.shape == (C, -(-H // fs), -(-W // fs), N, 6), F.shape
    assert not bool(jnp.isnan(F).any())
    err = float(jnp.max(jnp.abs(F - F_ref)))
    assert bool(jnp.allclose(F, F_ref, rtol=1e-4, atol=1e-5)), err


if __name__ == "__main__":
    key = jax.random.PRNGKey(0)
    k1, k2, k3 = jax.random.split(key, 3)

    # Primary small example (NCHW batch of feature maps, as in the module).
    _check(2, 4, 16, 16, 4, k1)
    # ceil_mode edge handling: H and W not divisible by feature_size.
    _check(1, 3, 18, 22, 5, k2)
    # H-tiled path: partial last H block + >=2 grid steps (megacore sharding).
    _check(1, 1, 100, 64, 4, k3)

    print("KERNEL_OK")
</pallas_src>

<mosaic_0001>
module attributes {stable_mosaic.version = 11 : i64} {
  func.func @kernel(%arg0: i32, %arg1: i32, %arg2: memref<1x16x16xf32, #tpu.memory_space<vmem>>, %arg3: memref<1x16x16xf32, #tpu.memory_space<vmem>>, %arg4: memref<1x16x16xf32, #tpu.memory_space<vmem>>, %arg5: memref<4x16xf32, #tpu.memory_space<vmem>>, %arg6: memref<16x4xf32, #tpu.memory_space<vmem>>, %arg7: memref<6x1x4x4xf32, #tpu.memory_space<vmem>>) attributes {dimension_semantics = [#tpu.dimension_semantics<parallel>, #tpu.dimension_semantics<parallel>], iteration_bounds = array<i64: 8, 1>, scalar_prefetch = 0 : i64, scratch_operands = 0 : i64, tpu.core_type = #tpu.core_type<tc>, window_params = [{transform_indices = @transform_0, window_bounds = array<i64: 1, 16, 16>}, {transform_indices = @transform_1, window_bounds = array<i64: 1, 16, 16>}, {transform_indices = @transform_2, window_bounds = array<i64: 1, 16, 16>}, {pipeline_mode = #tpu.pipeline_mode<synchronous>, transform_indices = @transform_3, window_bounds = array<i64: 4, 16>}, {pipeline_mode = #tpu.pipeline_mode<synchronous>, transform_indices = @transform_4, window_bounds = array<i64: 16, 4>}, {transform_indices = @transform_5, window_bounds = array<i64: 6, 1, 4, 4>}]} {
    %c16_i32 = arith.constant 16 : i32
    %0 = arith.muli %arg1, %c16_i32 : i32
    %1 = tpu.iota {dimensions = array<i32: 0>} : vector<16x1xi32>
    %2 = vector.broadcast %0 : i32 to vector<16x1xi32>
    %3 = arith.addi %2, %1 : vector<16x1xi32>
    %c16_i32_0 = arith.constant 16 : i32
    %4 = vector.broadcast %c16_i32_0 : i32 to vector<16x1xi32>
    %5 = arith.cmpi slt, %3, %4 : vector<16x1xi32>
    %c4_i32 = arith.constant 4 : i32
    %6 = arith.muli %arg1, %c4_i32 : i32
    %7 = tpu.iota {dimensions = array<i32: 0>} : vector<4x4xi32>
    %8 = vector.broadcast %6 : i32 to vector<4x4xi32>
    %9 = arith.addi %8, %7 : vector<4x4xi32>
    %10 = tpu.iota {dimensions = array<i32: 1>} : vector<4x4xi32>
    %c4_i32_1 = arith.constant 4 : i32
    %11 = vector.broadcast %c4_i32_1 : i32 to vector<4x4xi32>
    %12 = arith.muli %9, %11 : vector<4x4xi32>
    %c16_i32_2 = arith.constant 16 : i32
    %13 = vector.broadcast %c16_i32_2 : i32 to vector<4x4xi32>
    %14 = arith.subi %13, %12 : vector<4x4xi32>
    %c1_i32 = arith.constant 1 : i32
    %c4_i32_3 = arith.constant 4 : i32
    %15 = vector.broadcast %c1_i32 : i32 to vector<4x4xi32>
    %16 = arith.maxsi %15, %14 : vector<4x4xi32>
    %17 = vector.broadcast %c4_i32_3 : i32 to vector<4x4xi32>
    %18 = arith.minsi %17, %16 : vector<4x4xi32>
    %c4_i32_4 = arith.constant 4 : i32
    %19 = vector.broadcast %c4_i32_4 : i32 to vector<4x4xi32>
    %20 = arith.muli %10, %19 : vector<4x4xi32>
    %c16_i32_5 = arith.constant 16 : i32
    %21 = vector.broadcast %c16_i32_5 : i32 to vector<4x4xi32>
    %22 = arith.subi %21, %20 : vector<4x4xi32>
    %c1_i32_6 = arith.constant 1 : i32
    %c4_i32_7 = arith.constant 4 : i32
    %23 = vector.broadcast %c1_i32_6 : i32 to vector<4x4xi32>
    %24 = arith.maxsi %23, %22 : vector<4x4xi32>
    %25 = vector.broadcast %c4_i32_7 : i32 to vector<4x4xi32>
    %26 = arith.minsi %25, %24 : vector<4x4xi32>
    %27 = arith.muli %18, %26 : vector<4x4xi32>
    %28 = arith.sitofp %27 : vector<4x4xi32> to vector<4x4xf32>
    %cst = arith.constant 1.000000e+00 : f32
    %29 = vector.broadcast %cst : f32 to vector<4x4xf32>
    %30 = arith.divf %29, %28 : vector<4x4xf32>
    %c0 = arith.constant 0 : index
    %c0_8 = arith.constant 0 : index
    %31 = vector.load %arg5[%c0, %c0_8] : memref<4x16xf32, #tpu.memory_space<vmem>>, vector<4x16xf32>
    %c0_9 = arith.constant 0 : index
    %c0_10 = arith.constant 0 : index
    %32 = vector.load %arg6[%c0_9, %c0_10] : memref<16x4xf32, #tpu.memory_space<vmem>>, vector<16x4xf32>
    %c0_11 = arith.constant 0 : index
    %c0_12 = arith.constant 0 : index
    %c0_13 = arith.constant 0 : index
    %33 = vector.load %arg2[%c0_11, %c0_12, %c0_13] : memref<1x16x16xf32, #tpu.memory_space<vmem>>, vector<1x16x16xf32>
    %34 = vector.shape_cast %33 : vector<1x16x16xf32> to vector<16x16xf32>
    %cst_14 = arith.constant 0.000000e+00 : f32
    %35 = vector.shape_cast %5 : vector<16x1xi1> to vector<16x1xi1>
    %36 = vector.broadcast %35 : vector<16x1xi1> to vector<16x16xi1>
    %37 = vector.broadcast %cst_14 : f32 to vector<16x16xf32>
    %38 = arith.select %36, %34, %37 : vector<16x16xi1>, vector<16x16xf32>
    %cst_15 = arith.constant dense<0.000000e+00> : vector<4x16xf32>
    %39 = tpu.matmul %31, %38, %cst_15 {dimension_numbers = #tpu.dot_dimension_numbers<[1], [0], [0], [1], [0, 0, 1, 1], [], []>, precision = #tpu.contract_precision<fp32>} : vector<4x16xf32>, vector<16x16xf32>, vector<4x16xf32> -> vector<4x16xf32>
    %cst_16 = arith.constant dense<0.000000e+00> : vector<4x4xf32>
    %40 = tpu.matmul %39, %32, %cst_16 {dimension_numbers = #tpu.dot_dimension_numbers<[1], [0], [0], [1], [0, 0, 1, 1], [], []>, precision = #tpu.contract_precision<fp32>} : vector<4x16xf32>, vector<16x4xf32>, vector<4x4xf32> -> vector<4x4xf32>
    %41 = arith.mulf %38, %38 : vector<16x16xf32>
    %cst_17 = arith.constant dense<0.000000e+00> : vector<4x16xf32>
    %42 = tpu.matmul %31, %41, %cst_17 {dimension_numbers = #tpu.dot_dimension_numbers<[1], [0], [0], [1], [0, 0, 1, 1], [], []>, precision = #tpu.contract_precision<fp32>} : vector<4x16xf32>, vector<16x16xf32>, vector<4x16xf32> -> vector<4x16xf32>
    %cst_18 = arith.constant dense<0.000000e+00> : vector<4x4xf32>
    %43 = tpu.matmul %42, %32, %cst_18 {dimension_numbers = #tpu.dot_dimension_numbers<[1], [0], [0], [1], [0, 0, 1, 1], [], []>, precision = #tpu.contract_precision<fp32>} : vector<4x16xf32>, vector<16x4xf32>, vector<4x4xf32> -> vector<4x4xf32>
    %44 = arith.mulf %40, %30 : vector<4x4xf32>
    %45 = arith.mulf %43, %30 : vector<4x4xf32>
    %46 = arith.mulf %44, %44 : vector<4x4xf32>
    %47 = arith.subf %45, %46 : vector<4x4xf32>
    %c0_19 = arith.constant 0 : index
    %c0_20 = arith.constant 0 : index
    %c0_21 = arith.constant 0 : index
    %c0_22 = arith.constant 0 : index
    %48 = vector.load %arg7[%c0_19, %c0_20, %c0_21, %c0_22] : memref<6x1x4x4xf32, #tpu.memory_space<vmem>>, vector<1x1x4x4xf32>
    %49 = vector.shape_cast %48 : vector<1x1x4x4xf32> to vector<4x4xf32>
    %50 = vector.shape_cast %44 : vector<4x4xf32> to vector<1x1x4x4xf32>
    tpu.vector_store %arg7[%c0_19, %c0_20, %c0_21, %c0_22], %50 {strides = array<i32>} : memref<6x1x4x4xf32, #tpu.memory_space<vmem>>, vector<1x1x4x4xf32>,
    %c1 = arith.constant 1 : index
    %c0_23 = arith.constant 0 : index
    %c0_24 = arith.constant 0 : index
    %c0_25 = arith.constant 0 : index
    %51 = vector.load %arg7[%c1, %c0_23, %c0_24, %c0_25] : memref<6x1x4x4xf32, #tpu.memory_space<vmem>>, vector<1x1x4x4xf32>
    %52 = vector.shape_cast %51 : vector<1x1x4x4xf32> to vector<4x4xf32>
    %53 = vector.shape_cast %47 : vector<4x4xf32> to vector<1x1x4x4xf32>
    tpu.vector_store %arg7[%c1, %c0_23, %c0_24, %c0_25], %53 {strides = array<i32>} : memref<6x1x4x4xf32, #tpu.memory_space<vmem>>, vector<1x1x4x4xf32>,
    %c0_26 = arith.constant 0 : index
    %c0_27 = arith.constant 0 : index
    %c0_28 = arith.constant 0 : index
    %54 = vector.load %arg3[%c0_26, %c0_27, %c0_28] : memref<1x16x16xf32, #tpu.memory_space<vmem>>, vector<1x16x16xf32>
    %55 = vector.shape_cast %54 : vector<1x16x16xf32> to vector<16x16xf32>
    %cst_29 = arith.constant 0.000000e+00 : f32
    %56 = vector.shape_cast %5 : vector<16x1xi1> to vector<16x1xi1>
    %57 = vector.broadcast %56 : vector<16x1xi1> to vector<16x16xi1>
    %58 = vector.broadcast %cst_29 : f32 to vector<16x16xf32>
    %59 = arith.select %57, %55, %58 : vector<16x16xi1>, vector<16x16xf32>
    %cst_30 = arith.constant dense<0.000000e+00> : vector<4x16xf32>
    %60 = tpu.matmul %31, %59, %cst_30 {dimension_numbers = #tpu.dot_dimension_numbers<[1], [0], [0], [1], [0, 0, 1, 1], [], []>, precision = #tpu.contract_precision<fp32>} : vector<4x16xf32>, vector<16x16xf32>, vector<4x16xf32> -> vector<4x16xf32>
    %cst_31 = arith.constant dense<0.000000e+00> : vector<4x4xf32>
    %61 = tpu.matmul %60, %32, %cst_31 {dimension_numbers = #tpu.dot_dimension_numbers<[1], [0], [0], [1], [0, 0, 1, 1], [], []>, precision = #tpu.contract_precision<fp32>} : vector<4x16xf32>, vector<16x4xf32>, vector<4x4xf32> -> vector<4x4xf32>
    %62 = arith.mulf %59, %59 : vector<16x16xf32>
    %cst_32 = arith.constant dense<0.000000e+00> : vector<4x16xf32>
    %63 = tpu.matmul %31, %62, %cst_32 {dimension_numbers = #tpu.dot_dimension_numbers<[1], [0], [0], [1], [0, 0, 1, 1], [], []>, precision = #tpu.contract_precision<fp32>} : vector<4x16xf32>, vector<16x16xf32>, vector<4x16xf32> -> vector<4x16xf32>
    %cst_33 = arith.constant dense<0.000000e+00> : vector<4x4xf32>
    %64 = tpu.matmul %63, %32, %cst_33 {dimension_numbers = #tpu.dot_dimension_numbers<[1], [0], [0], [1], [0, 0, 1, 1], [], []>, precision = #tpu.contract_precision<fp32>} : vector<4x16xf32>, vector<16x4xf32>, vector<4x4xf32> -> vector<4x4xf32>
    %65 = arith.mulf %61, %30 : vector<4x4xf32>
    %66 = arith.mulf %64, %30 : vector<4x4xf32>
    %67 = arith.mulf %65, %65 : vector<4x4xf32>
    %68 = arith.subf %66, %67 : vector<4x4xf32>
    %c2 = arith.constant 2 : index
    %c0_34 = arith.constant 0 : index
    %c0_35 = arith.constant 0 : index
    %c0_36 = arith.constant 0 : index
    %69 = vector.load %arg7[%c2, %c0_34, %c0_35, %c0_36] : memref<6x1x4x4xf32, #tpu.memory_space<vmem>>, vector<1x1x4x4xf32>
    %70 = vector.shape_cast %69 : vector<1x1x4x4xf32> to vector<4x4xf32>
    %71 = vector.shape_cast %65 : vector<4x4xf32> to vector<1x1x4x4xf32>
    tpu.vector_store %arg7[%c2, %c0_34, %c0_35, %c0_36], %71 {strides = array<i32>} : memref<6x1x4x4xf32, #tpu.memory_space<vmem>>, vector<1x1x4x4xf32>,
    %c3 = arith.constant 3 : index
    %c0_37 = arith.constant 0 : index
    %c0_38 = arith.constant 0 : index
    %c0_39 = arith.constant 0 : index
    %72 = vector.load %arg7[%c3, %c0_37, %c0_38, %c0_39] : memref<6x1x4x4xf32, #tpu.memory_space<vmem>>, vector<1x1x4x4xf32>
    %73 = vector.shape_cast %72 : vector<1x1x4x4xf32> to vector<4x4xf32>
    %74 = vector.shape_cast %68 : vector<4x4xf32> to vector<1x1x4x4xf32>
    tpu.vector_store %arg7[%c3, %c0_37, %c0_38, %c0_39], %74 {strides = array<i32>} : memref<6x1x4x4xf32, #tpu.memory_space<vmem>>, vector<1x1x4x4xf32>,
    %c0_40 = arith.constant 0 : index
    %c0_41 = arith.constant 0 : index
    %c0_42 = arith.constant 0 : index
    %75 = vector.load %arg4[%c0_40, %c0_41, %c0_42] : memref<1x16x16xf32, #tpu.memory_space<vmem>>, vector<1x16x16xf32>
    %76 = vector.shape_cast %75 : vector<1x16x16xf32> to vector<16x16xf32>
    %cst_43 = arith.constant 0.000000e+00 : f32
    %77 = vector.shape_cast %5 : vector<16x1xi1> to vector<16x1xi1>
    %78 = vector.broadcast %77 : vector<16x1xi1> to vector<16x16xi1>
    %79 = vector.broadcast %cst_43 : f32 to vector<16x16xf32>
    %80 = arith.select %78, %76, %79 : vector<16x16xi1>, vector<16x16xf32>
    %cst_44 = arith.constant dense<0.000000e+00> : vector<4x16xf32>
    %81 = tpu.matmul %31, %80, %cst_44 {dimension_numbers = #tpu.dot_dimension_numbers<[1], [0], [0], [1], [0, 0, 1, 1], [], []>, precision = #tpu.contract_precision<fp32>} : vector<4x16xf32>, vector<16x16xf32>, vector<4x16xf32> -> vector<4x16xf32>
    %cst_45 = arith.constant dense<0.000000e+00> : vector<4x4xf32>
    %82 = tpu.matmul %81, %32, %cst_45 {dimension_numbers = #tpu.dot_dimension_numbers<[1], [0], [0], [1], [0, 0, 1, 1], [], []>, precision = #tpu.contract_precision<fp32>} : vector<4x16xf32>, vector<16x4xf32>, vector<4x4xf32> -> vector<4x4xf32>
    %83 = arith.mulf %80, %80 : vector<16x16xf32>
    %cst_46 = arith.constant dense<0.000000e+00> : vector<4x16xf32>
    %84 = tpu.matmul %31, %83, %cst_46 {dimension_numbers = #tpu.dot_dimension_numbers<[1], [0], [0], [1], [0, 0, 1, 1], [], []>, precision = #tpu.contract_precision<fp32>} : vector<4x16xf32>, vector<16x16xf32>, vector<4x16xf32> -> vector<4x16xf32>
    %cst_47 = arith.constant dense<0.000000e+00> : vector<4x4xf32>
    %85 = tpu.matmul %84, %32, %cst_47 {dimension_numbers = #tpu.dot_dimension_numbers<[1], [0], [0], [1], [0, 0, 1, 1], [], []>, precision = #tpu.contract_precision<fp32>} : vector<4x16xf32>, vector<16x4xf32>, vector<4x4xf32> -> vector<4x4xf32>
    %86 = arith.mulf %82, %30 : vector<4x4xf32>
    %87 = arith.mulf %85, %30 : vector<4x4xf32>
    %88 = arith.mulf %86, %86 : vector<4x4xf32>
    %89 = arith.subf %87, %88 : vector<4x4xf32>
    %c4 = arith.constant 4 : index
    %c0_48 = arith.constant 0 : index
    %c0_49 = arith.constant 0 : index
    %c0_50 = arith.constant 0 : index
    %90 = vector.load %arg7[%c4, %c0_48, %c0_49, %c0_50] : memref<6x1x4x4xf32, #tpu.memory_space<vmem>>, vector<1x1x4x4xf32>
    %91 = vector.shape_cast %90 : vector<1x1x4x4xf32> to vector<4x4xf32>
    %92 = vector.shape_cast %86 : vector<4x4xf32> to vector<1x1x4x4xf32>
    tpu.vector_store %arg7[%c4, %c0_48, %c0_49, %c0_50], %92 {strides = array<i32>} : memref<6x1x4x4xf32, #tpu.memory_space<vmem>>, vector<1x1x4x4xf32>,
    %c5 = arith.constant 5 : index
    %c0_51 = arith.constant 0 : index
    %c0_52 = arith.constant 0 : index
    %c0_53 = arith.constant 0 : index
    %93 = vector.load %arg7[%c5, %c0_51, %c0_52, %c0_53] : memref<6x1x4x4xf32, #tpu.memory_space<vmem>>, vector<1x1x4x4xf32>
    %94 = vector.shape_cast %93 : vector<1x1x4x4xf32> to vector<4x4xf32>
    %95 = vector.shape_cast %89 : vector<4x4xf32> to vector<1x1x4x4xf32>
    tpu.vector_store %arg7[%c5, %c0_51, %c0_52, %c0_53], %95 {strides = array<i32>} : memref<6x1x4x4xf32, #tpu.memory_space<vmem>>, vector<1x1x4x4xf32>,
    return
  }
  func.func @transform_0(%arg0: i32, %arg1: i32) -> (i32, i32, i32) {
    %c0_i32 = arith.constant 0 : i32
    %c0_i32_0 = arith.constant 0 : i32
    return %arg0, %arg1, %c0_i32 : i32, i32, i32
  }
  func.func @transform_1(%arg0: i32, %arg1: i32) -> (i32, i32, i32) {
    %c0_i32 = arith.constant 0 : i32
    %c0_i32_0 = arith.constant 0 : i32
    return %arg0, %arg1, %c0_i32 : i32, i32, i32
  }
  func.func @transform_2(%arg0: i32, %arg1: i32) -> (i32, i32, i32) {
    %c0_i32 = arith.constant 0 : i32
    %c0_i32_0 = arith.constant 0 : i32
    return %arg0, %arg1, %c0_i32 : i32, i32, i32
  }
  func.func @transform_3(%arg0: i32, %arg1: i32) -> (i32, i32) {
    %c0_i32 = arith.constant 0 : i32
    %c0_i32_0 = arith.constant 0 : i32
    %c0_i32_1 = arith.constant 0 : i32
    return %c0_i32, %c0_i32_0 : i32, i32
  }
  func.func @transform_4(%arg0: i32, %arg1: i32) -> (i32, i32) {
    %c0_i32 = arith.constant 0 : i32
    %c0_i32_0 = arith.constant 0 : i32
    %c0_i32_1 = arith.constant 0 : i32
    return %c0_i32, %c0_i32_0 : i32, i32
  }
  func.func @transform_5(%arg0: i32, %arg1: i32) -> (i32, i32, i32, i32) {
    %c0_i32 = arith.constant 0 : i32
    %c0_i32_0 = arith.constant 0 : i32
    %c0_i32_1 = arith.constant 0 : i32
    return %c0_i32, %arg0, %arg1, %c0_i32_0 : i32, i32, i32, i32
  }
}

</mosaic_0001>

<bundles_post_ra>
// kernel: tpu_custom_call.1
= control target key start
LH: loop header
LB: loop body
LE: loop exit
PB: predicated region body
PF: predicated region fallthrough
CT: control target
= control target key end

     0   :  { %s3209_s0 = inlined_call_operand.hbm [shape: f32[8,16,16], index: 0, kind: input, shape index: {}]   ;;  %s3210_s1 = inlined_call_operand.hbm [shape: f32[8,16,16], index: 1, kind: input, shape index: {}]   ;;  %s3211_s2 = inlined_call_operand.hbm [shape: f32[8,16,16], index: 2, kind: input, shape index: {}]   ;;  %s3212_s3 = inlined_call_operand.vmem [shape: f32[4,16], index: 3, kind: input, shape index: {}]   ;;  %s3213_s4 = inlined_call_operand.vmem [shape: f32[16,4], index: 4, kind: input, shape index: {}]   ;;  %s3214_s5 = inlined_call_operand.vmem [shape: f32[6,8,4,4], index: 5, kind: output, shape index: {}]  }
   0x1   :  { %3219 = sst [smem:[#allocation15_spill]] %s3210_s1 }
   0x2   :  { %10 = vsyncpa [#allocation3], 0 }
   0x3   :  { %12 = vsyncpa [#allocation3 + $0x1], 0 }
   0x4   :  { %13 = vsyncpa [#allocation5], 0 }
   0x5   :  { %15 = vsyncpa [#allocation5 + $0x1], 0  ;;  %s2843_s18 = smov 0   ;;  %s2845_s19 = smov 0  }
   0x6   :  { %s2847_s20 = smov 0   ;;  %s2849_s21 = smov 0  }
   0x7   :  { %s2851_s22 = smov 0   ;;  %s2853_s23 = smov 0  }
   0x8 LB: > { %3220 = sst [smem:[#allocation10_spill]] %s2797_s20  ;;  %s2872_s24 = sadd.s32 4294967295, %s2809_s23   ;;  %s2809_s23 = sphi %s2853_s23, %s21_s23   ;;  %s2805_s22 = sphi %s2851_s22, %s3235_s22   ;;  %s2801_s21 = sphi %s2849_s21, %s3238_s21   ;;  %s2797_s20 = sphi %s2847_s20, %s3233_s20   ;;  %s2793_s19 = sphi %s2845_s19, %s3237_s19   ;;  %s2789_s18 = sphi %s2843_s18, %s3236_s18  }
   0x9   : > { %3221 = sst [smem:[#allocation11_spill]] %s2805_s22  ;;  %s33_s25 = sadd.s32 1, %s2805_s22 }
   0xa   : > { %3222 = sst [smem:[#allocation12_spill]] %s2809_s23  ;;  %p35_p0 = scmp.ge.s32.totalorder %s33_s25, 8 }
   0xb   : > { %s42_s26 = sadd.s32 1, %s2797_s20  ;;  %p49_p1 = scmp.ne.s32.totalorder %s2797_s20, %s2793_s19 }
   0xc   : > { %p50_p2 = scmp.eq.s32.totalorder %s2809_s23, 0  ;;  %s3240_s25 = smov (%p35_p0, %s33_s25), 0 }
   0xd   : > { %3223 = sst [smem:[#allocation13_spill]] %s3240_s25  ;;  %p55_p4 = scmp.ne.s32.totalorder %s2793_s19, %s2789_s18 }
   0xe   : > { %p2881_p3 = por %p50_p2, %p49_p1  ;;  %s37_s28 = ssub.s32 %s2805_s22, %s3240_s25 }
   0xf   : > { %p56_p5 = scmp.eq.s32.totalorder %s2872_s24, 0  ;;  %p40_p6 = scmp.eq.s32.totalorder %s37_s28, 0 }
  0x10   : > { %p179_p7 = scmp.eq.s32.totalorder %s2872_s24, 7  ;;  %p2612_p10 = scmp.lt.s32.totalorder %s2809_s23, 8 }
  0x11   : > { %p2890_p8 = por %p56_p5, %p55_p4  ;;  %s211_s7 = sand.u32 1, %s2797_s20  }
  0x12   : > { %s2895_s30 = scalar_select %p40_p6, %s2797_s20, %s42_s26  }
  0x13   : > { %p2897_p9 = por %p179_p7, %p49_p1  ;;  %s2904_s8 = sshll.u32 %s2805_s22, 4 }
  0x14   : > { %3226 = sst [smem:[#allocation14_spill]] %s2895_s30  ;;  %s2571_s9 = sshll.u32 %s211_s7, 4 }
  0x15   : > { %p2908_p11 = pnand %p2612_p10, %p2881_p3  ;;  %s235_s11 = sand.u32 1, %s2809_s23  }
  0x16   : > { %s3229_s1 = sld [smem:[#allocation15_spill]]  ;;  %s239_s15 = scalar_lea.vmem [#allocation4], %s2571_s9 }
  0x17   : > { %s249_s16 = sshll.u32 %s239_s15, 4  ;;  %p2580_p12 = scmp.ge.s32.totalorder %s2809_s23, 1  ;;  %s250_s16 = int_to_ptr.vmem [resolvable:$true] %s249_s16 }
  0x18   : > { %s236_s18 = scalar_lea.sflag [#allocation5], %s235_s11  ;;  %s2811_s26 = smov 128  }
  0x19   : > { %s2812_s27 = smov 8   ;;  %p281_p13 = scmp.lt.s32.totalorder %s2809_s23, 9 }
  0x1a   : > { %s215_s15 = scalar_lea.vmem [#allocation2], %s2571_s9  ;;  %s212_s11 = scalar_lea.sflag [#allocation3], %s211_s7 }
  0x1b   : > { %p2921_p0 = pnand %p2580_p12, %p281_p13  ;;  %s263_s30 = scalar_lea.vmem [#allocation6], %s2571_s9 }
  0x1c   : > { %s246_s14 = scalar_lea.hbm %s3229_s1, %s2904_s8  ;;  %s225_s1 = sshll.u32 %s215_s15, 4  ;;  %s226_s1 = int_to_ptr.vmem [resolvable:$true] %s225_s1 }
  0x1d   : > { %s247_s17 = sshll.u32 %s246_s14, 4  ;;  %s222_s14 = scalar_lea.hbm %s3209_s0, %s2904_s8  ;;  %s248_s17 = int_to_ptr.hbm [resolvable:$true] %s247_s17 }
  0x1e   : > { %2608 = dma.hbm_to_vmem [thread:$0]  (!%p2908_p11), %s248_s17, 256, %s250_s16, %s236_s18, %s2811_s26, %s2811_s26, %s2812_s27  }
  0x1f   : > { %s223_s25 = sshll.u32 %s222_s14, 4  ;;  %s270_s17 = scalar_lea.hbm %s3211_s2, %s2904_s8  ;;  %s224_s25 = int_to_ptr.hbm [resolvable:$true] %s223_s25 }
  0x20   : > { %2605 = dma.hbm_to_vmem [thread:$0]  (!%p2908_p11), %s224_s25, 256, %s226_s1, %s212_s11, %s2811_s26, %s2811_s26, %s2812_s27  }
  0x21   : > { %s273_s20 = sshll.u32 %s263_s30, 4  ;;  %s271_s23 = sshll.u32 %s270_s17, 4  ;;  %s274_s20 = int_to_ptr.vmem [resolvable:$true] %s273_s20  ;;  %s272_s23 = int_to_ptr.hbm [resolvable:$true] %s271_s23 }
  0x22   : > { %2611 = dma.hbm_to_vmem [thread:$0]  (!%p2908_p11), %s272_s23, 256, %s274_s20, %s236_s18, %s2811_s26, %s2811_s26, %s2812_s27  }
  0x23   : > { %285 = sbr.rel (%p2921_p0) target bundleno = 1198 (0x4ae), region = 40  ;;  %s2940_s12 = sand.u32 (!%p2921_p0), 1, %s2793_s19  }
  0x24   : > { %s2943_s1 = sshll.u32 (!%p2921_p0), %s2940_s12, 4  ;;  %s288_s22 = scalar_lea.sflag (!%p2921_p0), [#allocation3], %s2940_s12 }
  0x25   : > { %s291_s25 = scalar_lea.vmem (!%p2921_p0), [#allocation2], %s2943_s1 }
  0x28   : > { %2780 = dma.done.wait (%p2890_p8), %s288_s22, 256  }
  0x29   : > { %2782 = vsyncadd (%p2890_p8), %s288_s22, 4294967040  ;;  %s297_s20 = sand.u32 1, %s2872_s24   ;;  %s301_s30 = scalar_lea.vmem [#allocation4], %s2943_s1 }
  0x2a   : > { %s298_s23 = scalar_lea.sflag [#allocation5], %s297_s20 }
  0x2b   : > { %2784 = dma.done.wait (%p2890_p8), %s298_s23, 512  }
  0x2c   : > { %2786 = vsyncadd (%p2890_p8), %s298_s23, 4294966784  ;;  %vm405_vm0 = vcmask 130048   ;;  %v398_v0 = vld [vmem:[%s291_s25 + $0x8] sm:$0xff]  ;;  %v397_v1 = vld [vmem:[%s291_s25] sm:$0xff]  ;;  %v352_v60 = vlaneseq  ;;  %s2595_s18 = smul.u32 24, %s2940_s12  ;;  %vm1057_vm9 = vcmask 27648  }
  0x2d   : > { %v394_v2 = vld [vmem:[%s3212_s3] sm:$0xf]  ;;  %v423_v3 = vand.u32 4294901760, %v398_v0  ;;  %v425_v4 = vand.u32 4294901760, %v397_v1  ;;  %v396_v19 = vld [vmem:[%s3213_s4 + $0x8] sm:$0xff]  ;;  %v731_v21 = vmul.f32 %v398_v0, %v398_v0  ;;  %v730_v33 = vmul.f32 %v397_v1, %v397_v1  ;;  %s311_s27 = scalar_lea.vmem [#allocation6], %s2943_s1 }
  0x2e   : > { %v407_v5 = vsel %vm405_vm0, %v394_v2, 0  ;;  %v2982_v20 = vand.u32 4294901760, %v396_v19  ;;  %v395_v22 = vld [vmem:[%s3213_s4] sm:$0xff]  ;;  %v353_v61 = vshrl.u32 %v352_v60, 7  ;;  %v364_v62 = vand.u32 127, %v352_v60  ;;  %s3058_s26 = scalar_lea.vmem [#allocation7], %s2595_s18 }
  0x2f   : > { %v2961_v6 = vand.u32 4294901760, %v407_v5  ;;  %v451_v7 = vsub.f32 %v398_v0, %v423_v3  ;;  %424 = vmatpush.msra.mxu0 %v423_v3  ;;  %v457_v8 = vsub.f32 %v397_v1, %v425_v4  ;;  %508 = vmatpush.msra.mxu3 %v423_v3  ;;  %v2990_v24 = vand.u32 4294901760, %v395_v22  ;;  %s2589_s28 = sshll.u32 (%p2897_p9), %s2801_s21, 2 }
  0x30   : > { %v2988_v23 = vsub.f32 %v396_v19, %v2982_v20  ;;  %v746_v27 = vand.u32 4294901760, %v731_v21  ;;  %v748_v35 = vand.u32 4294901760, %v730_v33  ;;  %v365_v63 = vmul.u32 4, %v353_v61  ;;  %s2382_s15 = scalar_lea.vmem (%p2897_p9), %s3214_s5, %s2589_s28 }
  0x31   : > { %v2964_v9 = vsub.f32 %v407_v5, %v2961_v6  ;;  %483 = vmatpush.msra.mxu2 %v451_v7  ;;  %426 = vmatpush.msra.mxu0 %v425_v4  ;;  %v452_v10 = vand.u32 4294901760, %v451_v7  ;;  %v458_v11 = vand.u32 4294901760, %v457_v8  ;;  %v2998_v26 = vsub.f32 %v395_v22, %v2990_v24 }
  0x32   : > { %510 = vmatpush.msra.mxu3 %v425_v4  ;;  %v2995_v25 = vand.u32 4294901760, %v2988_v23  ;;  %v774_v34 = vsub.f32 %v731_v21, %v746_v27  ;;  %v780_v38 = vsub.f32 %v730_v33, %v748_v35  ;;  %v371_v0 = vmul.u32 4, %v364_v62 }
  0x33   : > { %v2967_v12 = vand.u32 4294901760, %v2964_v9  ;;  %486 = vmatpush.msra.mxu2 %v457_v8  ;;  %v453_v13 = vsub.f32 %v451_v7, %v452_v10  ;;  %535 = vmatpush.msrb.mxu0 %v452_v10  ;;  %v459_v14 = vsub.f32 %v457_v8, %v458_v11  ;;  %v3006_v29 = vand.u32 4294901760, %v2998_v26 }
  0x34   : > { %489 = vmatmul.f32.vlgmr.msra.gmra.mxu2 %v2964_v9  ;;  %v615_v28 = vsub.f32 %v2988_v23, %v2995_v25  ;;  %v775_v37 = vand.u32 4294901760, %v774_v34  ;;  %v781_v43 = vand.u32 4294901760, %v780_v38  ;;  %v366_v1 = vsub.s32 16, %v365_v63 }
  0x35   : > { %v430_v15 = vsub.f32 %v2964_v9, %v2967_v12  ;;  %514 = vmatmul.f32.vlgmr.msra.gmra.mxu3 %v2967_v12  ;;  %v454_v16 = vand.u32 4294901760, %v453_v13  ;;  %v460_v17 = vand.u32 4294901760, %v459_v14  ;;  %539 = vmatpush.msrb.mxu0 %v458_v11  ;;  %v621_v31 = vsub.f32 %v2998_v26, %v3006_v29 }
  0x36   : > { %586 = vmatpush.msrb.mxu2 %v2982_v20  ;;  %v3010_v30 = vand.u32 4294901760, %v615_v28  ;;  %v776_v42 = vsub.f32 %v774_v34, %v775_v37  ;;  %v782_v47 = vsub.f32 %v780_v38, %v781_v43  ;;  %v372_v2 = vsub.s32 16, %v371_v0 }
  0x37   : > { %v2973_v18 = vand.u32 4294901760, %v430_v15  ;;  %455 = vmatpush.msra.mxu1 %v454_v16  ;;  %v3016_v32 = vand.u32 4294901760, %v621_v31  ;;  %vm367_vm1 = vcmp.gt.s32.totalorder %v366_v1, 1 }
  0x38   : > { %588 = vmatpush.msrb.mxu2 %v2990_v24  ;;  %617 = vmatpush.msrb.mxu3 %v3010_v30  ;;  %v777_v46 = vand.u32 4294901760, %v776_v42  ;;  %v783_v49 = vand.u32 4294901760, %v782_v47  ;;  %vm373_vm2 = vcmp.gt.s32.totalorder %v372_v2, 1 }
  0x39   : > { %432 = vmatmul.f32.vlgmr.msra.gmra.mxu0 %v2973_v18  ;;  %461 = vmatpush.msra.mxu1 %v460_v17 }
  0x3a   : > { %463 = vmatmul.f32.vlgmr.msra.gmra.mxu1 %v2961_v6  ;;  %645 = vmatpush.msra.mxu0 %v2988_v23 }
  0x3b   : > { %560 = vmatpush.msrb.mxu1 %v423_v3  ;;  %697 = vmatpush.msra.mxu2 %v2995_v25  ;;  %v368_v3 = vsel %vm367_vm1, %v366_v1, 1 }
  0x3c   : > { %648 = vmatpush.msra.mxu0 %v2998_v26  ;;  %623 = vmatpush.msrb.mxu3 %v3016_v32  ;;  %vm369_vm3 = vcmp.lt.s32.totalorder %v368_v3, 4 }
  0x3d   : > { %562 = vmatpush.msrb.mxu1 %v425_v4  ;;  %701 = vmatpush.msra.mxu2 %v3006_v29  ;;  %v374_v4 = vsel %vm373_vm2, %v372_v2, 1  ;;  %v370_v5 = vsel %vm369_vm3, %v368_v3, 4 }
  0x3e   : > { %722 = vmatpush.msra.mxu3 %v2982_v20  ;;  %vm375_vm4 = vcmp.lt.s32.totalorder %v374_v4, 4 }
  0x3f   : > { %670 = vmatpush.msra.mxu1 %v2982_v20  ;;  %v376_v7 = vsel %vm375_vm4, %v374_v4, 4 }
  0x40   : > { %724 = vmatpush.msra.mxu3 %v2990_v24  ;;  %v377_v8 = vmul.u32 %v376_v7, %v370_v5 }
  0x41   : > { %541 = vmatmul.f32.vlgmr.msrb.gmra.mxu0 %v2961_v6  ;;  %672 = vmatpush.msra.mxu1 %v2990_v24 }
  0x42   : > { %564 = vmatmul.f32.vlgmr.msrb.gmra.mxu1 %v2961_v6  ;;  %747 = vmatpush.msrb.mxu0 %v746_v27  ;;  %v378_v10 = vcvt.s32.f32 %v377_v8 }
  0x43   : > { %778 = vmatpush.msrb.mxu1 %v777_v46 }
  0x44   : > { %749 = vmatpush.msrb.mxu0 %v748_v35  ;;  %2663 = vrcp.f32 %v378_v10  ;;  %vm384_vm5 = vweird.f32 %v378_v10  ;;  %v390_v22 = vand.u32 2147483648, %v378_v10  ;;  %v388_v31 = vand.u32 2147483647, %v378_v10 }
  0x45   : > { %784 = vmatpush.msrb.mxu1 %v783_v49 }
  0x46   : > { %vm389_vm8 = vcmp.eq.f32.partialorder %v388_v31, 8.507059e+37 }
  0x4a   : > { %v2664_v11 = vpop.eup %2663 }
  0x4b   : > { %v380_v13 = vmul.f32 %v2664_v11, %v378_v10  ;;  %vm385_vm6 = vweird.f32 %v2664_v11 }
  0x4c   : > { %vm386_vm7 = vmor %vm384_vm5, %vm385_vm6 }
  0x4d   : > { %v381_v14 = vsub.f32 1.0, %v380_v13 }
  0x4f   : > { %v382_v17 = vmul.f32 %v2664_v11, %v381_v14 }
  0x51   : > { %v383_v28 = vadd.f32 %v2664_v11, %v382_v17 }
  0xb6   : > { %v433_v36 = vpop.f32.mrf.mxu0 }
  0xb7   : > { %v464_v39 = vpop.f32.mrf.mxu1  ;;  %v490_v40 = vpop.f32.mrf.mxu2 }
  0xb8   : > { %v465_v41 = vadd.f32 %v464_v39, %v433_v36  ;;  %v515_v44 = vpop.f32.mrf.mxu3 }
  0xba   : > { %v491_v45 = vadd.f32 %v490_v40, %v465_v41  ;;  %v3043_v40 = vld [vmem:[%s301_s30 + $0x8] sm:$0xff] }
  0xbb   : > { %v1079_v42 = vand.u32 4294901760, %v3043_v40 }
  0xbc   : > { %v516_v48 = vadd.f32 %v515_v44, %v491_v45  ;;  %v3050_v44 = vld [vmem:[%s301_s30] sm:$0xff] }
  0xbd   : > { %v1107_v46 = vsub.f32 %v3043_v40, %v1079_v42  ;;  %v1081_v47 = vand.u32 4294901760, %v3050_v44 }
  0xbe   : > { %v542_v50 = vpop.f32.mrf.mxu0 }
  0xbf   : > { %v543_v51 = vadd.f32 %v542_v50, %v516_v48  ;;  %v565_v52 = vpop.f32.mrf.mxu1  ;;  %v1108_v50 = vand.u32 4294901760, %v1107_v46 }
  0xc1   : > { %v566_v53 = vadd.f32 %v565_v52, %v543_v51  ;;  %v1113_v51 = vsub.f32 %v3050_v44, %v1081_v47 }
  0xc3   : > { %v569_v54 = vsel %vm405_vm0, %v566_v53, 0  ;;  %v1109_v53 = vsub.f32 %v1107_v46, %v1108_v50 }
  0xc4   : > { %v589_v55 = vand.u32 4294901760, %v569_v54 }
  0xc6   : > { %v590_v56 = vsub.f32 %v569_v54, %v589_v55  ;;  %625 = vmatmul.f32.vlgmr.msrb.gmra.mxu3 %v589_v55  ;;  %v1114_v54 = vand.u32 4294901760, %v1113_v51 }
  0xc7   : > { %831 = vmatpush.msrb.mxu3 %v746_v27 }
  0xc8   : > { %651 = vmatmul.f32.vlgmr.msra.gmra.mxu0 %v590_v56  ;;  %v591_v57 = vand.u32 4294901760, %v590_v56 }
  0xc9   : > { %833 = vmatpush.msrb.mxu3 %v748_v35  ;;  %858 = vmatpush.msra.mxu0 %v775_v37 }
  0xca   : > { %676 = vmatmul.f32.vlgmr.msra.gmra.mxu1 %v591_v57  ;;  %v592_v58 = vsub.f32 %v590_v56, %v591_v57 }
  0xcb   : > { %883 = vmatpush.msra.mxu1 %v746_v27  ;;  %862 = vmatpush.msra.mxu0 %v781_v43 }
  0xcc   : > { %v593_v59 = vand.u32 4294901760, %v592_v58  ;;  %v1110_v58 = vand.u32 4294901760, %v1109_v53 }
  0xcd   : > { %885 = vmatpush.msra.mxu1 %v748_v35  ;;  %v387_v35 = vsel %vm386_vm7, %v2664_v11, %v383_v28 }
  0xce   : > { %594 = vmatmul.f32.vlgmr.msrb.gmra.mxu2 %v593_v59  ;;  %726 = vmatmul.f32.vlgmr.msra.gmra.mxu3 %v589_v55  ;;  %v1115_v59 = vsub.f32 %v1113_v51, %v1114_v54 }
  0xcf   : > { %806 = vmatpush.msrb.mxu2 %v774_v34  ;;  %940 = vmatpush.msra.mxu3 %v3010_v30  ;;  %v391_v34 = vor.u32 1.1754944e-38, %v390_v22 }
  0xd0   : > { %755 = vmatmul.f32.vlgmr.msrb.gmra.mxu0 %v2973_v18  ;;  %v1116_v62 = vand.u32 4294901760, %v1115_v59 }
  0xd1   : > { %809 = vmatpush.msrb.mxu2 %v780_v38  ;;  %946 = vmatpush.msra.mxu3 %v3016_v32  ;;  %v3046_v43 = vsel %vm389_vm8, %v391_v34, %v387_v35 }
  0xd2   : > { %786 = vmatmul.f32.vlgmr.msrb.gmra.mxu1 %v2961_v6  ;;  %968 = vmatpush.msrb.mxu0 %v2988_v23 }
  0xd3   : > { %993 = vmatpush.msrb.mxu1 %v2982_v20 }
  0xd4   : > { %971 = vmatpush.msrb.mxu0 %v2998_v26 }
  0xd5   : > { %995 = vmatpush.msrb.mxu1 %v2990_v24 }
  0xd6   : > { %703 = vmatmul.f32.vlgmr.msra.gmra.mxu2 %v589_v55  ;;  %837 = vmatmul.f32.vlgmr.msrb.gmra.mxu3 %v2967_v12 }
  0xd7   : > { %909 = vmatpush.msra.mxu2 %v2982_v20  ;;  %1045 = vmatpush.msrb.mxu3 %v2982_v20 }
  0xd8   : > { %864 = vmatmul.f32.vlgmr.msra.gmra.mxu0 %v2961_v6 }
  0xd9   : > { %911 = vmatpush.msra.mxu2 %v2990_v24  ;;  %1047 = vmatpush.msrb.mxu3 %v2990_v24 }
  0xda   : > { %887 = vmatmul.f32.vlgmr.msra.gmra.mxu1 %v2961_v6  ;;  %1080 = vmatpush.msra.mxu0 %v1079_v42 }
  0xdb   : > { %1111 = vmatpush.msra.mxu1 %v1110_v58 }
  0xdc   : > { %1082 = vmatpush.msra.mxu0 %v1081_v47 }
  0xdd   : > { %1117 = vmatpush.msra.mxu1 %v1116_v62 }
  0xde   : > { %812 = vmatmul.f32.vlgmr.msrb.gmra.mxu2 %v2964_v9 }
  0xdf   : > { %1020 = vmatpush.msrb.mxu2 %v2995_v25 }
  0xe1   : > { %1024 = vmatpush.msrb.mxu2 %v3006_v29 }
 0x145   : > { %v652_v16 = vpop.f32.mrf.mxu0 }
 0x147   : > { %v677_v33 = vpop.f32.mrf.mxu1 }
 0x149   : > { %v626_v15 = vpop.f32.mrf.mxu3 }
 0x14d   : > { %v756_v37 = vpop.f32.mrf.mxu0 }
 0x14f   : > { %v787_v48 = vpop.f32.mrf.mxu1 }
 0x150   : > { %v788_v52 = vadd.f32 %v787_v48, %v756_v37 }
 0x151   : > { %v595_v19 = vpop.f32.mrf.mxu2  ;;  %v727_v38 = vpop.f32.mrf.mxu3 }
 0x152   : > { %v627_v21 = vadd.f32 %v626_v15, %v595_v19 }
 0x154   : > { %v653_v27 = vadd.f32 %v652_v16, %v627_v21  ;;  %v1387_v21 = vmul.f32 %v3043_v40, %v3043_v40 }
 0x155   : > { %v865_v60 = vpop.f32.mrf.mxu0 }
 0x156   : > { %v678_v36 = vadd.f32 %v677_v33, %v653_v27  ;;  %v1402_v31 = vand.u32 4294901760, %v1387_v21  ;;  %v1386_v33 = vmul.f32 %v3050_v44, %v3050_v44 }
 0x157   : > { %v888_v63 = vpop.f32.mrf.mxu1 }
 0x158   : > { %v1430_v35 = vsub.f32 %v1387_v21, %v1402_v31 }
 0x159   : > { %v704_v39 = vpop.f32.mrf.mxu2  ;;  %v838_v56 = vpop.f32.mrf.mxu3 }
 0x15a   : > { %v705_v41 = vadd.f32 %v704_v39, %v678_v36  ;;  %v1404_v36 = vand.u32 4294901760, %v1386_v33 }
 0x15c   : > { %v728_v45 = vadd.f32 %v727_v38, %v705_v41  ;;  %v1431_v41 = vand.u32 4294901760, %v1430_v35  ;;  %v1436_v40 = vsub.f32 %v1386_v33, %v1404_v36 }
 0x15e   : > { %v3055_v49 = vmul.f32 %v728_v45, %v3046_v43 }
 0x160   : > { %1058 = vst.msk [vmem:[%s3058_s26] sm:$0xf] %vm1057_vm9, %v3055_v49  ;;  %v1055_v38 = vmul.f32 %v3055_v49, %v3055_v49 }
 0x161   : > { %v813_v55 = vpop.f32.mrf.mxu2 }
 0x162   : > { %v814_v57 = vadd.f32 %v813_v55, %v788_v52 }
 0x164   : > { %v839_v61 = vadd.f32 %v838_v56, %v814_v57 }
 0x166   : > { %v866_v0 = vadd.f32 %v865_v60, %v839_v61 }
 0x168   : > { %v889_v1 = vadd.f32 %v888_v63, %v866_v0 }
 0x16a   : > { %v892_v2 = vsel %vm405_vm0, %v889_v1, 0 }
 0x16b   : > { %v912_v3 = vand.u32 4294901760, %v892_v2 }
 0x16d   : > { %v913_v4 = vsub.f32 %v892_v2, %v912_v3  ;;  %948 = vmatmul.f32.vlgmr.msra.gmra.mxu3 %v912_v3 }
 0x16e   : > { %1164 = vmatpush.msra.mxu3 %v1079_v42 }
 0x16f   : > { %974 = vmatmul.f32.vlgmr.msrb.gmra.mxu0 %v913_v4  ;;  %v914_v5 = vand.u32 4294901760, %v913_v4 }
 0x170   : > { %1166 = vmatpush.msra.mxu3 %v1081_v47  ;;  %1191 = vmatpush.msrb.mxu0 %v1108_v50 }
 0x171   : > { %999 = vmatmul.f32.vlgmr.msrb.gmra.mxu1 %v914_v5  ;;  %v915_v7 = vsub.f32 %v913_v4, %v914_v5 }
 0x172   : > { %1216 = vmatpush.msrb.mxu1 %v1079_v42  ;;  %1195 = vmatpush.msrb.mxu0 %v1114_v54 }
 0x173   : > { %v916_v8 = vand.u32 4294901760, %v915_v7 }
 0x174   : > { %1218 = vmatpush.msrb.mxu1 %v1081_v47  ;;  %v1437_v47 = vand.u32 4294901760, %v1436_v40 }
 0x175   : > { %917 = vmatmul.f32.vlgmr.msra.gmra.mxu2 %v916_v8  ;;  %1049 = vmatmul.f32.vlgmr.msrb.gmra.mxu3 %v912_v3 }
 0x176   : > { %1139 = vmatpush.msra.mxu2 %v1107_v46  ;;  %1273 = vmatpush.msrb.mxu3 %v3010_v30  ;;  %v1432_v46 = vsub.f32 %v1430_v35, %v1431_v41  ;;  %v1438_v52 = vsub.f32 %v1436_v40, %v1437_v47 }
 0x177   : > { %1088 = vmatmul.f32.vlgmr.msra.gmra.mxu0 %v2973_v18 }
 0x178   : > { %1142 = vmatpush.msra.mxu2 %v1113_v51  ;;  %1279 = vmatpush.msrb.mxu3 %v3016_v32  ;;  %v1433_v51 = vand.u32 4294901760, %v1432_v46  ;;  %v1439_v49 = vand.u32 4294901760, %v1438_v52 }
 0x179   : > { %1119 = vmatmul.f32.vlgmr.msra.gmra.mxu1 %v2961_v6  ;;  %1301 = vmatpush.msra.mxu0 %v2988_v23 }
 0x17a   : > { %1326 = vmatpush.msra.mxu1 %v2982_v20 }
 0x17b   : > { %1304 = vmatpush.msra.mxu0 %v2998_v26 }
 0x17c   : > { %1328 = vmatpush.msra.mxu1 %v2990_v24 }
 0x17d   : > { %1026 = vmatmul.f32.vlgmr.msrb.gmra.mxu2 %v912_v3  ;;  %1170 = vmatmul.f32.vlgmr.msra.gmra.mxu3 %v2967_v12 }
 0x17e   : > { %1242 = vmatpush.msrb.mxu2 %v2982_v20  ;;  %1378 = vmatpush.msra.mxu3 %v2982_v20 }
 0x17f   : > { %1197 = vmatmul.f32.vlgmr.msrb.gmra.mxu0 %v2961_v6 }
 0x180   : > { %1244 = vmatpush.msrb.mxu2 %v2990_v24  ;;  %1380 = vmatpush.msra.mxu3 %v2990_v24 }
 0x181   : > { %1220 = vmatmul.f32.vlgmr.msrb.gmra.mxu1 %v2961_v6  ;;  %1403 = vmatpush.msrb.mxu0 %v1402_v31 }
 0x182   : > { %1434 = vmatpush.msrb.mxu1 %v1433_v51 }
 0x183   : > { %1405 = vmatpush.msrb.mxu0 %v1404_v36 }
 0x184   : > { %1440 = vmatpush.msrb.mxu1 %v1439_v49 }
 0x185   : > { %1145 = vmatmul.f32.vlgmr.msra.gmra.mxu2 %v2964_v9 }
 0x186   : > { %1353 = vmatpush.msra.mxu2 %v2995_v25 }
 0x188   : > { %1357 = vmatpush.msra.mxu2 %v3006_v29 }
 0x1ec   : > { %v975_v11 = vpop.f32.mrf.mxu0 }
 0x1ee   : > { %v1000_v16 = vpop.f32.mrf.mxu1 }
 0x1f0   : > { %v949_v10 = vpop.f32.mrf.mxu3 }
 0x1f4   : > { %v1089_v19 = vpop.f32.mrf.mxu0 }
 0x1f6   : > { %v1120_v37 = vpop.f32.mrf.mxu1 }
 0x1f7   : > { %v1121_v45 = vadd.f32 %v1120_v37, %v1089_v19 }
 0x1f8   : > { %v918_v13 = vpop.f32.mrf.mxu2  ;;  %v1050_v22 = vpop.f32.mrf.mxu3 }
 0x1f9   : > { %v950_v14 = vadd.f32 %v949_v10, %v918_v13  ;;  %v3111_v13 = vld [vmem:[%s311_s27 + $0x8] sm:$0xff] }
 0x1fb   : > { %v976_v15 = vadd.f32 %v975_v11, %v950_v14 }
 0x1fc   : > { %v1198_v53 = vpop.f32.mrf.mxu0 }
 0x1fd   : > { %v1001_v17 = vadd.f32 %v1000_v16, %v976_v15  ;;  %v1735_v15 = vand.u32 4294901760, %v3111_v13  ;;  %v3114_v16 = vld [vmem:[%s311_s27] sm:$0xff] }
 0x1fe   : > { %v1221_v55 = vpop.f32.mrf.mxu1  ;;  %v1737_v21 = vand.u32 4294901760, %v3114_v16 }
 0x1ff   : > { %v1763_v19 = vsub.f32 %v3111_v13, %v1735_v15 }
 0x200   : > { %v1027_v27 = vpop.f32.mrf.mxu2  ;;  %v1171_v44 = vpop.f32.mrf.mxu3 }
 0x201   : > { %v1028_v28 = vadd.f32 %v1027_v27, %v1001_v17 }
 0x203   : > { %v1051_v34 = vadd.f32 %v1050_v22, %v1028_v28  ;;  %v1764_v28 = vand.u32 4294901760, %v1763_v19 }
 0x205   : > { %v1054_v39 = vmul.f32 %v1051_v34, %v3046_v43  ;;  %v1765_v34 = vsub.f32 %v1763_v19, %v1764_v28 }
 0x207   : > { %v1056_v42 = vsub.f32 %v1054_v39, %v1055_v38  ;;  %v1766_v39 = vand.u32 4294901760, %v1765_v34 }
 0x208   : > { %v1146_v48 = vpop.f32.mrf.mxu2 }
 0x209   : > { %2584 = vst.msk [vmem:[%s3058_s26 + $0x4] sm:$0xf] %vm1057_vm9, %v1056_v42  ;;  %v1147_v50 = vadd.f32 %v1146_v48, %v1121_v45 }
 0x20b   : > { %v1172_v54 = vadd.f32 %v1171_v44, %v1147_v50 }
 0x20d   : > { %v1199_v56 = vadd.f32 %v1198_v53, %v1172_v54 }
 0x20f   : > { %v1222_v57 = vadd.f32 %v1221_v55, %v1199_v56 }
 0x211   : > { %v1225_v58 = vsel %vm405_vm0, %v1222_v57, 0 }
 0x212   : > { %v1245_v59 = vand.u32 4294901760, %v1225_v58 }
 0x214   : > { %v1246_v60 = vsub.f32 %v1225_v58, %v1245_v59  ;;  %1281 = vmatmul.f32.vlgmr.msrb.gmra.mxu3 %v1245_v59 }
 0x215   : > { %1487 = vmatpush.msrb.mxu3 %v1402_v31 }
 0x216   : > { %1307 = vmatmul.f32.vlgmr.msra.gmra.mxu0 %v1246_v60  ;;  %v1247_v61 = vand.u32 4294901760, %v1246_v60 }
 0x217   : > { %1489 = vmatpush.msrb.mxu3 %v1404_v36  ;;  %1514 = vmatpush.msra.mxu0 %v1431_v41 }
 0x218   : > { %1332 = vmatmul.f32.vlgmr.msra.gmra.mxu1 %v1247_v61  ;;  %v1248_v62 = vsub.f32 %v1246_v60, %v1247_v61 }
 0x219   : > { %1539 = vmatpush.msra.mxu1 %v1402_v31  ;;  %1518 = vmatpush.msra.mxu0 %v1437_v47  ;;  %v1769_v31 = vsub.f32 %v3114_v16, %v1737_v21 }
 0x21a   : > { %v1249_v63 = vand.u32 4294901760, %v1248_v62  ;;  %v2043_v62 = vmul.f32 %v3111_v13, %v3111_v13 }
 0x21b   : > { %1541 = vmatpush.msra.mxu1 %v1404_v36 }
 0x21c   : > { %1250 = vmatmul.f32.vlgmr.msrb.gmra.mxu2 %v1249_v63  ;;  %1382 = vmatmul.f32.vlgmr.msra.gmra.mxu3 %v1245_v59 }
 0x21d   : > { %1462 = vmatpush.msrb.mxu2 %v1430_v35  ;;  %1596 = vmatpush.msra.mxu3 %v3010_v30  ;;  %v1770_v35 = vand.u32 4294901760, %v1769_v31 }
 0x21e   : > { %1411 = vmatmul.f32.vlgmr.msrb.gmra.mxu0 %v2973_v18 }
 0x21f   : > { %1465 = vmatpush.msrb.mxu2 %v1436_v40  ;;  %1602 = vmatpush.msra.mxu3 %v3016_v32  ;;  %v1771_v41 = vsub.f32 %v1769_v31, %v1770_v35 }
 0x220   : > { %1442 = vmatmul.f32.vlgmr.msrb.gmra.mxu1 %v2961_v6  ;;  %1624 = vmatpush.msrb.mxu0 %v2988_v23 }
 0x221   : > { %1649 = vmatpush.msrb.mxu1 %v2982_v20  ;;  %v1772_v45 = vand.u32 4294901760, %v1771_v41 }
 0x222   : > { %1627 = vmatpush.msrb.mxu0 %v2998_v26 }
 0x223   : > { %1651 = vmatpush.msrb.mxu1 %v2990_v24 }
 0x224   : > { %1359 = vmatmul.f32.vlgmr.msra.gmra.mxu2 %v1245_v59  ;;  %1493 = vmatmul.f32.vlgmr.msrb.gmra.mxu3 %v2967_v12 }
 0x225   : > { %1565 = vmatpush.msra.mxu2 %v2982_v20  ;;  %1701 = vmatpush.msrb.mxu3 %v2982_v20 }
 0x226   : > { %1520 = vmatmul.f32.vlgmr.msra.gmra.mxu0 %v2961_v6 }
 0x227   : > { %1567 = vmatpush.msra.mxu2 %v2990_v24  ;;  %1703 = vmatpush.msrb.mxu3 %v2990_v24 }
 0x228   : > { %1543 = vmatmul.f32.vlgmr.msra.gmra.mxu1 %v2961_v6  ;;  %1736 = vmatpush.msra.mxu0 %v1735_v15 }
 0x229   : > { %1767 = vmatpush.msra.mxu1 %v1766_v39 }
 0x22a   : > { %1738 = vmatpush.msra.mxu0 %v1737_v21 }
 0x22b   : > { %1773 = vmatpush.msra.mxu1 %v1772_v45 }
 0x22c   : > { %1468 = vmatmul.f32.vlgmr.msrb.gmra.mxu2 %v2964_v9 }
 0x22d   : > { %1676 = vmatpush.msrb.mxu2 %v2995_v25 }
 0x22f   : > { %1680 = vmatpush.msrb.mxu2 %v3006_v29 }
 0x293   : > { %v1308_v1 = vpop.f32.mrf.mxu0 }
 0x295   : > { %v1333_v5 = vpop.f32.mrf.mxu1 }
 0x297   : > { %v1282_v0 = vpop.f32.mrf.mxu3 }
 0x29b   : > { %v1412_v8 = vpop.f32.mrf.mxu0 }
 0x29d   : > { %v1443_v22 = vpop.f32.mrf.mxu1 }
 0x29e   : > { %v1444_v33 = vadd.f32 %v1443_v22, %v1412_v8 }
 0x29f   : > { %v1251_v2 = vpop.f32.mrf.mxu2  ;;  %v1383_v10 = vpop.f32.mrf.mxu3 }
 0x2a0   : > { %v1283_v3 = vadd.f32 %v1282_v0, %v1251_v2  ;;  %v2058_v2 = vand.u32 4294901760, %v2043_v62 }
 0x2a2   : > { %v1309_v4 = vadd.f32 %v1308_v1, %v1283_v3  ;;  %v2042_v3 = vmul.f32 %v3114_v16, %v3114_v16 }
 0x2a3   : > { %v1521_v40 = vpop.f32.mrf.mxu0 }
 0x2a4   : > { %v1334_v7 = vadd.f32 %v1333_v5, %v1309_v4  ;;  %v2086_v5 = vsub.f32 %v2043_v62, %v2058_v2 }
 0x2a5   : > { %v1544_v46 = vpop.f32.mrf.mxu1 }
 0x2a7   : > { %v1360_v11 = vpop.f32.mrf.mxu2  ;;  %v1494_v37 = vpop.f32.mrf.mxu3 }
 0x2a8   : > { %v1361_v14 = vadd.f32 %v1360_v11, %v1334_v7  ;;  %v2060_v7 = vand.u32 4294901760, %v2042_v3 }
 0x2aa   : > { %v1384_v17 = vadd.f32 %v1383_v10, %v1361_v14  ;;  %v2087_v14 = vand.u32 4294901760, %v2086_v5  ;;  %v2092_v13 = vsub.f32 %v2042_v3, %v2060_v7 }
 0x2ac   : > { %v3119_v27 = vmul.f32 %v1384_v17, %v3046_v43 }
 0x2ae   : > { %2585 = vst.msk [vmem:[%s3058_s26 + $0x8] sm:$0xf] %vm1057_vm9, %v3119_v27  ;;  %v1711_v10 = vmul.f32 %v3119_v27, %v3119_v27 }
 0x2af   : > { %v1469_v36 = vpop.f32.mrf.mxu2 }
 0x2b0   : > { %v1470_v38 = vadd.f32 %v1469_v36, %v1444_v33 }
 0x2b2   : > { %v1495_v42 = vadd.f32 %v1494_v37, %v1470_v38 }
 0x2b4   : > { %v1522_v47 = vadd.f32 %v1521_v40, %v1495_v42 }
 0x2b6   : > { %v1545_v48 = vadd.f32 %v1544_v46, %v1522_v47 }
 0x2b8   : > { %v1548_v44 = vsel %vm405_vm0, %v1545_v48, 0 }
 0x2b9   : > { %v1568_v50 = vand.u32 4294901760, %v1548_v44 }
 0x2bb   : > { %v1569_v51 = vsub.f32 %v1548_v44, %v1568_v50  ;;  %1604 = vmatmul.f32.vlgmr.msra.gmra.mxu3 %v1568_v50 }
 0x2bc   : > { %1820 = vmatpush.msra.mxu3 %v1735_v15 }
 0x2bd   : > { %1630 = vmatmul.f32.vlgmr.msrb.gmra.mxu0 %v1569_v51  ;;  %v1570_v52 = vand.u32 4294901760, %v1569_v51 }
 0x2be   : > { %1822 = vmatpush.msra.mxu3 %v1737_v21  ;;  %1847 = vmatpush.msrb.mxu0 %v1764_v28 }
 0x2bf   : > { %1655 = vmatmul.f32.vlgmr.msrb.gmra.mxu1 %v1570_v52  ;;  %v1571_v53 = vsub.f32 %v1569_v51, %v1570_v52 }
 0x2c0   : > { %1872 = vmatpush.msrb.mxu1 %v1735_v15  ;;  %1851 = vmatpush.msrb.mxu0 %v1770_v35 }
 0x2c1   : > { %v1572_v54 = vand.u32 4294901760, %v1571_v53 }
 0x2c2   : > { %1874 = vmatpush.msrb.mxu1 %v1737_v21  ;;  %v2093_v21 = vand.u32 4294901760, %v2092_v13 }
 0x2c3   : > { %1573 = vmatmul.f32.vlgmr.msra.gmra.mxu2 %v1572_v54  ;;  %1705 = vmatmul.f32.vlgmr.msrb.gmra.mxu3 %v1568_v50 }
 0x2c4   : > { %1795 = vmatpush.msra.mxu2 %v1763_v19  ;;  %1929 = vmatpush.msrb.mxu3 %v3010_v30  ;;  %v2088_v19 = vsub.f32 %v2086_v5, %v2087_v14  ;;  %v2094_v33 = vsub.f32 %v2092_v13, %v2093_v21 }
 0x2c5   : > { %1744 = vmatmul.f32.vlgmr.msra.gmra.mxu0 %v2973_v18 }
 0x2c6   : > { %1798 = vmatpush.msra.mxu2 %v1769_v31  ;;  %1935 = vmatpush.msrb.mxu3 %v3016_v32  ;;  %v2089_v31 = vand.u32 4294901760, %v2088_v19  ;;  %v2095_v27 = vand.u32 4294901760, %v2094_v33  ;;  %v2401_v19 = vld [vmem:[%s3058_s26 + $0x4] sm:$0xf] (%p2897_p9) }
 0x2c7   : > { %1775 = vmatmul.f32.vlgmr.msra.gmra.mxu1 %v2961_v6  ;;  %1957 = vmatpush.msra.mxu0 %v2988_v23  ;;  %2402 = vst [vmem:[%s2382_s15 + $0x20] sm:$0xf] (%p2897_p9), %v2401_v19 }
 0x2c8   : > { %1982 = vmatpush.msra.mxu1 %v2982_v20 }
 0x2c9   : > { %1960 = vmatpush.msra.mxu0 %v2998_v26 }
 0x2ca   : > { %1984 = vmatpush.msra.mxu1 %v2990_v24 }
 0x2cb   : > { %1682 = vmatmul.f32.vlgmr.msrb.gmra.mxu2 %v1568_v50  ;;  %1826 = vmatmul.f32.vlgmr.msra.gmra.mxu3 %v2967_v12 }
 0x2cc   : > { %1898 = vmatpush.msrb.mxu2 %v2982_v20  ;;  %2034 = vmatpush.msra.mxu3 %v2982_v20 }
 0x2cd   : > { %1853 = vmatmul.f32.vlgmr.msrb.gmra.mxu0 %v2961_v6 }
 0x2ce   : > { %1900 = vmatpush.msrb.mxu2 %v2990_v24  ;;  %2036 = vmatpush.msra.mxu3 %v2990_v24 }
 0x2cf   : > { %1876 = vmatmul.f32.vlgmr.msrb.gmra.mxu1 %v2961_v6  ;;  %2059 = vmatpush.msrb.mxu0 %v2058_v2 }
 0x2d0   : > { %2090 = vmatpush.msrb.mxu1 %v2089_v31 }
 0x2d1   : > { %2061 = vmatpush.msrb.mxu0 %v2060_v7 }
 0x2d2   : > { %2096 = vmatpush.msrb.mxu1 %v2095_v27 }
 0x2d3   : > { %1801 = vmatmul.f32.vlgmr.msra.gmra.mxu2 %v2964_v9 }
 0x2d4   : > { %2009 = vmatpush.msra.mxu2 %v2995_v25 }
 0x2d6   : > { %2013 = vmatpush.msra.mxu2 %v3006_v29 }
 0x33a   : > { %v1631_v55 = vpop.f32.mrf.mxu0 }
 0x33c   : > { %v1656_v59 = vpop.f32.mrf.mxu1 }
 0x33e   : > { %v1605_v49 = vpop.f32.mrf.mxu3 }
 0x342   : > { %v1745_v61 = vpop.f32.mrf.mxu0 }
 0x344   : > { %v1776_v8 = vpop.f32.mrf.mxu1 }
 0x345   : > { %v1777_v17 = vadd.f32 %v1776_v8, %v1745_v61 }
 0x346   : > { %v1574_v56 = vpop.f32.mrf.mxu2  ;;  %v1706_v63 = vpop.f32.mrf.mxu3 }
 0x347   : > { %v1606_v57 = vadd.f32 %v1605_v49, %v1574_v56 }
 0x349   : > { %v1632_v58 = vadd.f32 %v1631_v55, %v1606_v57 }
 0x34a   : > { %v1854_v34 = vpop.f32.mrf.mxu0 }
 0x34b   : > { %v1657_v60 = vadd.f32 %v1656_v59, %v1632_v58 }
 0x34c   : > { %v1877_v36 = vpop.f32.mrf.mxu1 }
 0x34e   : > { %v1683_v0 = vpop.f32.mrf.mxu2  ;;  %v1827_v16 = vpop.f32.mrf.mxu3 }
 0x34f   : > { %v1684_v1 = vadd.f32 %v1683_v0, %v1657_v60 }
 0x351   : > { %v1707_v4 = vadd.f32 %v1706_v63, %v1684_v1 }
 0x353   : > { %v1710_v11 = vmul.f32 %v1707_v4, %v3046_v43 }
 0x355   : > { %v1712_v15 = vsub.f32 %v1710_v11, %v1711_v10 }
 0x356   : > { %v1802_v22 = vpop.f32.mrf.mxu2 }
 0x357   : > { %2586 = vst.msk [vmem:[%s3058_s26 + $0xc] sm:$0xf] %vm1057_vm9, %v1712_v15  ;;  %v1803_v28 = vadd.f32 %v1802_v22, %v1777_v17  ;;  %v2399_v17 = vld [vmem:[%s3058_s26] sm:$0xf] (%p2897_p9) }
 0x358   : > { %2400 = vst [vmem:[%s2382_s15] sm:$0xf] (%p2897_p9), %v2399_v17 }
 0x359   : > { %v1828_v35 = vadd.f32 %v1827_v16, %v1803_v28 }
 0x35b   : > { %v1855_v37 = vadd.f32 %v1854_v34, %v1828_v35 }
 0x35d   : > { %v1878_v38 = vadd.f32 %v1877_v36, %v1855_v37 }
 0x35f   : > { %v1881_v39 = vsel %vm405_vm0, %v1878_v38, 0 }
 0x360   : > { %v1901_v41 = vand.u32 4294901760, %v1881_v39 }
 0x362   : > { %v1902_v40 = vsub.f32 %v1881_v39, %v1901_v41  ;;  %1937 = vmatmul.f32.vlgmr.msrb.gmra.mxu3 %v1901_v41 }
 0x363   : > { %2143 = vmatpush.msrb.mxu3 %v2058_v2 }
 0x364   : > { %1963 = vmatmul.f32.vlgmr.msra.gmra.mxu0 %v1902_v40  ;;  %v1903_v42 = vand.u32 4294901760, %v1902_v40 }
 0x365   : > { %2145 = vmatpush.msrb.mxu3 %v2060_v7  ;;  %2170 = vmatpush.msra.mxu0 %v2087_v14 }
 0x366   : > { %1988 = vmatmul.f32.vlgmr.msra.gmra.mxu1 %v1903_v42  ;;  %v1904_v45 = vsub.f32 %v1902_v40, %v1903_v42 }
 0x367   : > { %2195 = vmatpush.msra.mxu1 %v2058_v2  ;;  %2174 = vmatpush.msra.mxu0 %v2093_v21  ;;  %v2405_v21 = vld [vmem:[%s3058_s26 + $0xc] sm:$0xf] (%p2897_p9) }
 0x368   : > { %v1905_v46 = vand.u32 4294901760, %v1904_v45  ;;  %2406 = vst [vmem:[%s2382_s15 + $0x60] sm:$0xf] (%p2897_p9), %v2405_v21 }
 0x369   : > { %2197 = vmatpush.msra.mxu1 %v2060_v7 }
 0x36a   : > { %1906 = vmatmul.f32.vlgmr.msrb.gmra.mxu2 %v1905_v46  ;;  %2038 = vmatmul.f32.vlgmr.msra.gmra.mxu3 %v1901_v41 }
 0x36b   : > { %2118 = vmatpush.msrb.mxu2 %v2086_v5  ;;  %2252 = vmatpush.msra.mxu3 %v3010_v30 }
 0x36c   : > { %2067 = vmatmul.f32.vlgmr.msrb.gmra.mxu0 %v2973_v18 }
 0x36d   : > { %2121 = vmatpush.msrb.mxu2 %v2092_v13  ;;  %2258 = vmatpush.msra.mxu3 %v3016_v32 }
 0x36e   : > { %2098 = vmatmul.f32.vlgmr.msrb.gmra.mxu1 %v2961_v6  ;;  %2280 = vmatpush.msrb.mxu0 %v2988_v23 }
 0x36f   : > { %2305 = vmatpush.msrb.mxu1 %v2982_v20 }
 0x370   : > { %2283 = vmatpush.msrb.mxu0 %v2998_v26 }
 0x371   : > { %2307 = vmatpush.msrb.mxu1 %v2990_v24 }
 0x372   : > { %2015 = vmatmul.f32.vlgmr.msra.gmra.mxu2 %v1901_v41  ;;  %2149 = vmatmul.f32.vlgmr.msrb.gmra.mxu3 %v2967_v12 }
 0x373   : > { %2221 = vmatpush.msra.mxu2 %v2982_v20  ;;  %2357 = vmatpush.msrb.mxu3 %v2982_v20 }
 0x374   : > { %2176 = vmatmul.f32.vlgmr.msra.gmra.mxu0 %v2961_v6 }
 0x375   : > { %2223 = vmatpush.msra.mxu2 %v2990_v24  ;;  %2359 = vmatpush.msrb.mxu3 %v2990_v24 }
 0x376   : > { %2199 = vmatmul.f32.vlgmr.msra.gmra.mxu1 %v2961_v6 }
 0x37a   : > { %2124 = vmatmul.f32.vlgmr.msrb.gmra.mxu2 %v2964_v9 }
 0x37b   : > { %2332 = vmatpush.msrb.mxu2 %v2995_v25 }
 0x37d   : > { %2336 = vmatpush.msrb.mxu2 %v3006_v29 }
 0x3e1   : > { %v1964_v18 = vpop.f32.mrf.mxu0 }
 0x3e3   : > { %v1989_v30 = vpop.f32.mrf.mxu1 }
 0x3e5   : > { %v1938_v12 = vpop.f32.mrf.mxu3 }
 0x3e9   : > { %v2068_v47 = vpop.f32.mrf.mxu0 }
 0x3eb   : > { %v2099_v6 = vpop.f32.mrf.mxu1 }
 0x3ec   : > { %v2100_v25 = vadd.f32 %v2099_v6, %v2068_v47 }
 0x3ed   : > { %v1907_v23 = vpop.f32.mrf.mxu2  ;;  %v2039_v48 = vpop.f32.mrf.mxu3 }
 0x3ee   : > { %v1939_v26 = vadd.f32 %v1938_v12, %v1907_v23 }
 0x3f0   : > { %v1965_v20 = vadd.f32 %v1964_v18, %v1939_v26 }
 0x3f1   : > { %v2177_v53 = vpop.f32.mrf.mxu0 }
 0x3f2   : > { %v1990_v32 = vadd.f32 %v1989_v30, %v1965_v20 }
 0x3f3   : > { %v2200_v49 = vpop.f32.mrf.mxu1 }
 0x3f5   : > { %v2016_v44 = vpop.f32.mrf.mxu2  ;;  %v2150_v29 = vpop.f32.mrf.mxu3 }
 0x3f6   : > { %v2017_v24 = vadd.f32 %v2016_v44, %v1990_v32 }
 0x3f8   : > { %v2040_v50 = vadd.f32 %v2039_v48, %v2017_v24 }
 0x3fa   : > { %v2365_v9 = vmul.f32 %v2040_v50, %v3046_v43 }
 0x3fc   : > { %2587 = vst.msk [vmem:[%s3058_s26 + $0x10] sm:$0xf] %vm1057_vm9, %v2365_v9  ;;  %v2367_v14 = vmul.f32 %v2365_v9, %v2365_v9 }
 0x3fd   : > { %v2125_v51 = vpop.f32.mrf.mxu2 }
 0x3fe   : > { %v2126_v52 = vadd.f32 %v2125_v51, %v2100_v25 }
 0x400   : > { %v2151_v54 = vadd.f32 %v2150_v29, %v2126_v52 }
 0x402   : > { %v2178_v55 = vadd.f32 %v2177_v53, %v2151_v54 }
 0x403   : > { %v2407_v22 = vld [vmem:[%s3058_s26 + $0x10] sm:$0xf] (%p2897_p9) }
 0x404   : > { %v2201_v56 = vadd.f32 %v2200_v49, %v2178_v55  ;;  %2408 = vst [vmem:[%s2382_s15 + $0x80] sm:$0xf] (%p2897_p9), %v2407_v22 }
 0x406   : > { %v2204_v57 = vsel %vm405_vm0, %v2201_v56, 0 }
 0x407   : > { %v2224_v58 = vand.u32 4294901760, %v2204_v57 }
 0x409   : > { %v2225_v59 = vsub.f32 %v2204_v57, %v2224_v58  ;;  %2260 = vmatmul.f32.vlgmr.msra.gmra.mxu3 %v2224_v58 }
 0x40b   : > { %2286 = vmatmul.f32.vlgmr.msrb.gmra.mxu0 %v2225_v59  ;;  %v2226_v60 = vand.u32 4294901760, %v2225_v59 }
 0x40d   : > { %2311 = vmatmul.f32.vlgmr.msrb.gmra.mxu1 %v2226_v60  ;;  %v2227_v61 = vsub.f32 %v2225_v59, %v2226_v60 }
 0x40f   : > { %v2228_v62 = vand.u32 4294901760, %v2227_v61 }
 0x411   : > { %2229 = vmatmul.f32.vlgmr.msra.gmra.mxu2 %v2228_v62  ;;  %2361 = vmatmul.f32.vlgmr.msrb.gmra.mxu3 %v2224_v58 }
 0x419   : > { %2338 = vmatmul.f32.vlgmr.msrb.gmra.mxu2 %v2224_v58 }
 0x488   : > { %v2287_v2 = vpop.f32.mrf.mxu0 }
 0x48a   : > { %v2312_v4 = vpop.f32.mrf.mxu1 }
 0x48c   : > { %v2261_v63 = vpop.f32.mrf.mxu3 }
 0x494   : > { %v2230_v0 = vpop.f32.mrf.mxu2  ;;  %v2362_v10 = vpop.f32.mrf.mxu3 }
 0x495   : > { %v2262_v1 = vadd.f32 %v2261_v63, %v2230_v0 }
 0x497   : > { %v2288_v3 = vadd.f32 %v2287_v2, %v2262_v1 }
 0x499   : > { %v2313_v5 = vadd.f32 %v2312_v4, %v2288_v3 }
 0x49c   : > { %v2339_v7 = vpop.f32.mrf.mxu2 }
 0x49d   : > { %v2340_v8 = vadd.f32 %v2339_v7, %v2313_v5 }
 0x49f   : > { %v2363_v11 = vadd.f32 %v2362_v10, %v2340_v8 }
 0x4a1   : > { %v2366_v13 = vmul.f32 %v2363_v11, %v3046_v43  ;;  %2379 = sbr.rel (!%p2897_p9) target bundleno = 1198 (0x4ae), region = 56  ;;  %v2403_v43 = vld [vmem:[%s3058_s26 + $0x8] sm:$0xf] (%p2897_p9) }
 0x4a2   : > { %2404 = vst [vmem:[%s2382_s15 + $0x40] sm:$0xf] (%p2897_p9), %v2403_v43 }
 0x4a3   : > { %v2368_v15 = vsub.f32 %v2366_v13, %v2367_v14 }
 0x4a5   : > { %2588 = vst.msk [vmem:[%s3058_s26 + $0x14] sm:$0xf] %vm1057_vm9, %v2368_v15 }
 0x4ac   : > { %v2409_v16 = vld [vmem:[%s3058_s26 + $0x14] sm:$0xf] }
 0x4ad   : > { %2410 = vst [vmem:[%s2382_s15 + $0xa0] sm:$0xf] %v2409_v16 }
 0x4ae PF: > { %s3231_s6 = sld [smem:[#allocation12_spill]]  ;;  %s3236_s18 = smov %s2793_s19 }
 0x4af   : > { %s3232_s21 = sld [smem:[#allocation10_spill]] }
 0x4b0   : > { %s3233_s20 = sld [smem:[#allocation14_spill]] }
 0x4b1   : > { %s3234_s11 = sld [smem:[#allocation11_spill]] }
 0x4b2   : > { %s3235_s22 = sld [smem:[#allocation13_spill]] }
 0x4b4   : > { %s21_s23 = sadd.s32 1, %s3231_s6  }
 0x4b5   : > { %p18_p1 = scmp.ge.s32.totalorder %s21_s23, 10   ;;  %s3237_s19 = smov %s3232_s21 }
 0x4b7   : > { %s3238_s21 = smov %s3234_s11  ;;  %20 = sbr.rel (!%p18_p1) target bundleno = 8 (0x8), region = 150 }
 0x4bc   :  { %2456 = vsyncpa [#allocation3], 1 }
 0x4bd   :  { %2458 = vsyncpa [#allocation3 + $0x1], 1 }
 0x4be   :  { %2459 = vsyncpa [#allocation5], 1 }
 0x4bf   :  { %2461 = vsyncpa [#allocation5 + $0x1], 1 }

</bundles_post_ra>
